<compile_context>
chip_gen: v5e
topology: v5e:2x2
jax: 0.10.0
libtpu: 0.0.40
codegen_flags: <defaults>
</compile_context>

<pallas_src>
import math

import jax
import jax.numpy as jnp
from jax.experimental import pallas as pl
from jax.experimental.pallas import tpu as pltpu

LANE = 128
_MIB = 1024 * 1024


def _pe_add_kernel(x_ref, pe_ref, o_ref):
    # (bb, tc) + (1, tc) broadcast add — pure VPU work, lane-dense stores.
    o_ref[...] = x_ref[...] + pe_ref[...]


def make_positional_encoding(d_model: int, patch_length: int,
                             dtype=jnp.float32) -> jnp.ndarray:
    """Sinusoidal PE table, shape (1, patch_length, d_model), built once in `dtype`."""
    position = jnp.arange(patch_length, dtype=jnp.float32)[:, None]            # (P, 1)
    div_term = jnp.exp(
        jnp.arange(0, d_model, 2, dtype=jnp.float32) * (-(math.log(10000.0) / d_model))
    )                                                                            # (ceil(D/2),)
    pe = jnp.zeros((patch_length, d_model), dtype=jnp.float32)
    pe = pe.at[:, 0::2].set(jnp.sin(position * div_term))
    # Guard odd d_model: cos fills only floor(D/2) columns (PyTorch would error here).
    pe = pe.at[:, 1::2].set(jnp.cos(position * div_term[: d_model // 2]))
    return pe[None, :, :].astype(dtype)                                          # (1, P, D)


def _hw_budgets():
    """Per-generation (x-tile target bytes, scoped-VMEM cap bytes).

    v7x: 64 MiB physical VMEM, ~3.2 TB/s HBM -> bigger tiles, tight cap.
    v6e: 128 MiB VMEM, ~1.4 TB/s             -> 4 MiB tiles, generous cap.
    v5e: 128 MiB VMEM, ~0.8 TB/s             -> 2 MiB tiles already hide per-step cost.
    Unknown chips fall back to values that are safe everywhere.
    """
    vmem_cap = None
    try:
        vmem_cap = int(pltpu.get_tpu_info().vmem_capacity_bytes)
    except Exception:
        pass
    kind = ""
    try:
        kind = jax.devices()[0].device_kind.lower()
    except Exception:
        pass
    if vmem_cap is not None and vmem_cap <= 64 * _MIB:
        return 6 * _MIB, 44 * _MIB          # v7x-class (64 MiB physical VMEM)
    if "v5" in kind:
        return 2 * _MIB, 16 * _MIB          # v5e: keep the small-tile / default-limit path
    if vmem_cap is not None and vmem_cap >= 128 * _MIB:
        return 4 * _MIB, 80 * _MIB          # v6e-class
    return 4 * _MIB, 40 * _MIB              # unknown: conservative, fits everywhere


def _choose_tiles(n_rows: int, row: int, itemsize: int, target: int, budget: int):
    """Pick (bb, tc): batch-row chunk and flat-column chunk.

    tc is a 128-multiple whenever row > 128 (the ragged last column block is
    masked via pl.cdiv); bb is a packed-sublane multiple (or the full dim) and
    is clamped so the double-buffered x+out+pe footprint fits `budget`.
    """
    sub = {1: 32, 2: 16}.get(itemsize, 8)     # packed sublane multiple per dtype

    if row <= LANE:
        tc = row                               # block == full dim -> always legal
    else:
        tc_cap = (row // LANE) * LANE if row % LANE else row
        tc = ((target // (sub * itemsize)) // LANE) * LANE
        tc = int(max(LANE, min(tc, tc_cap)))

    bb = max(1, target // (tc * itemsize))
    bb = max(sub, (bb // sub) * sub)           # keep sublane packing aligned
    # Clamp so 2 buffers x (x tile + out tile + pe tile) stays under budget.
    while bb > sub and 2 * (2 * bb * tc + tc) * itemsize > budget:
        bb = max(sub, ((bb // 2) // sub) * sub)
    if bb >= n_rows:
        bb = n_rows                            # block == full dim -> always legal
    return int(bb), int(tc)


def positional_encoding_forward(x: jnp.ndarray, pe: jnp.ndarray,
                                *, donate_x: bool = False,
                                force_pallas: bool = False) -> jnp.ndarray:
    """x: (B, L, D); pe: (1, P, D) with P >= L (ideally already in x.dtype).
    Returns x + pe[:, :L]."""
    B, L, D = x.shape
    assert pe.ndim == 3 and pe.shape[0] == 1, "pe must have shape (1, P, D)"
    P = pe.shape[1]
    assert pe.shape[2] == D, f"pe d_model {pe.shape[2]} != x d_model {D}"
    assert L <= P, f"sequence length {L} exceeds PE table length {P}"

    row = L * D
    itemsize = jnp.dtype(x.dtype).itemsize

    # Tiny inputs: kernel launch + pipeline prologue dominate; a fused XLA add
    # is strictly faster there.
    if not force_pallas and B * row * itemsize < 256 * 1024:
        return x + pe[:, :L, :].astype(x.dtype)

    target, vmem_cap = _hw_budgets()
    bb, tc = _choose_tiles(B, row, itemsize, target, vmem_cap)

    # Lane-dense 2D views. The :L slice of the PE table is a contiguous flat
    # prefix, so pass the *full* flat table and simply never visit column
    # blocks past cdiv(row, tc) — no sliced HBM copy materialized per call.
    x2 = x.reshape(B, row)
    pe2 = pe.reshape(1, P * D)
    if pe2.dtype != x.dtype:
        pe2 = pe2.astype(x.dtype)              # fallback only; precompute pe in x.dtype
    if tc % LANE != 0:
        # tc == row < 128: the block must equal the full last dim, so slice pe
        # exactly (tiny copy, < 128 elements).
        pe2 = pe2[:, :row]

    ncol = pl.cdiv(row, tc)
    nbat = pl.cdiv(B, bb)

    # Grid order: batch axis innermost so pe's block index is constant across
    # consecutive steps and its DMA is elided (pe stays VMEM-resident). When
    # there is only one column block, pe is trivially resident, so put the
    # batch axis outermost instead so both v7x TensorCores get grid work.
    if ncol > 1:
        grid = (ncol, nbat)
        x_map = lambda j, i: (i, j)
        pe_map = lambda j, i: (0, j)
    else:
        grid = (nbat, ncol)
        x_map = lambda i, j: (i, j)
        pe_map = lambda i, j: (0, j)

    # Double-buffered x + out blocks plus the (resident) pe block, with headroom;
    # capped per generation so it fits v7x's 64 MiB physical VMEM.
    needed = 2 * (2 * bb * tc + tc) * itemsize
    vmem_limit = int(min(vmem_cap, max(16 * _MIB, 2 * needed)))

    out2 = pl.pallas_call(
        _pe_add_kernel,
        out_shape=jax.ShapeDtypeStruct((B, row), x.dtype),
        grid_spec=pltpu.PrefetchScalarGridSpec(
            num_scalar_prefetch=0,
            grid=grid,
            in_specs=[
                pl.BlockSpec((bb, tc), x_map),    # x tile
                pl.BlockSpec((1, tc), pe_map),    # pe tile, resident across batch steps
            ],
            out_specs=pl.BlockSpec((bb, tc), x_map),
        ),
        compiler_params=pltpu.CompilerParams(
            dimension_semantics=("parallel", "parallel"),
            vmem_limit_bytes=vmem_limit,
        ),
        # Optional buffer donation (x2 -> out); off by default for safety.
        input_output_aliases=({0: 0} if donate_x else {}),
    )(x2, pe2)

    return out2.reshape(B, L, D)


if __name__ == "__main__":
    key0, key1 = jax.random.split(jax.random.PRNGKey(0), 2)

    # Shapes implied by the module: batch=2, seq=8 (<= patch_length=16), d_model=32.
    d_model, patch_length, batch, seq = 32, 16, 2, 8
    x = jax.random.normal(key0, (batch, seq, d_model), dtype=jnp.float32)
    pe = make_positional_encoding(d_model, patch_length, dtype=x.dtype)

    # Pallas path (forced, since this shape is below the small-input fallback).
    out = jax.block_until_ready(positional_encoding_forward(x, pe, force_pallas=True))
    ref = x + pe[:, :seq, :]
    assert out.shape == (batch, seq, d_model)
    assert jnp.allclose(out, ref, atol=1e-6), "pallas path mismatch vs reference"

    # Small-shape JAX fallback path (what tiny production calls take).
    out_fb = jax.block_until_ready(positional_encoding_forward(x, pe))
    assert jnp.allclose(out_fb, ref, atol=1e-6), "fallback path mismatch vs reference"

    # Second pallas check: non-128-aligned flat row (L*D = 480) exercises the
    # masked last column block and the full-flat-PE-table read path.
    d2, p2, b2, s2 = 96, 16, 4, 5
    x_u = jax.random.normal(key1, (b2, s2, d2), dtype=jnp.float32)
    pe_u = make_positional_encoding(d2, p2, dtype=x_u.dtype)
    out_u = jax.block_until_ready(
        positional_encoding_forward(x_u, pe_u, force_pallas=True))
    ref_u = x_u + pe_u[:, :s2, :]
    assert jnp.allclose(out_u, ref_u, atol=1e-6), "unaligned-row pallas path mismatch"

    print("KERNEL_OK")
</pallas_src>

<mosaic_0001>
module attributes {stable_mosaic.version = 11 : i64} {
  func.func @_pe_add_kernel(%arg0: i32, %arg1: i32, %arg2: memref<2x256xf32, #tpu.memory_space<vmem>>, %arg3: memref<1x256xf32, #tpu.memory_space<vmem>>, %arg4: memref<2x256xf32, #tpu.memory_space<vmem>>) attributes {dimension_semantics = [#tpu.dimension_semantics<parallel>, #tpu.dimension_semantics<parallel>], iteration_bounds = array<i64: 1, 1>, scalar_prefetch = 0 : i64, scratch_operands = 0 : i64, tpu.core_type = #tpu.core_type<tc>, window_params = [{transform_indices = @transform_0, window_bounds = array<i64: 2, 256>}, {transform_indices = @transform_1, window_bounds = array<i64: 1, 256>}, {transform_indices = @transform_2, window_bounds = array<i64: 2, 256>}]} {
    %c0 = arith.constant 0 : index
    %c0_0 = arith.constant 0 : index
    %0 = vector.load %arg2[%c0, %c0_0] : memref<2x256xf32, #tpu.memory_space<vmem>>, vector<2x256xf32>
    %c0_1 = arith.constant 0 : index
    %c0_2 = arith.constant 0 : index
    %1 = vector.load %arg3[%c0_1, %c0_2] : memref<1x256xf32, #tpu.memory_space<vmem>>, vector<1x256xf32>
    %2 = vector.broadcast %1 : vector<1x256xf32> to vector<2x256xf32>
    %3 = arith.addf %0, %2 : vector<2x256xf32>
    %c0_3 = arith.constant 0 : index
    %c0_4 = arith.constant 0 : index
    %4 = vector.load %arg4[%c0_3, %c0_4] : memref<2x256xf32, #tpu.memory_space<vmem>>, vector<2x256xf32>
    tpu.vector_store %arg4[%c0_3, %c0_4], %3 {strides = array<i32>} : memref<2x256xf32, #tpu.memory_space<vmem>>, vector<2x256xf32>,
    return
  }
  func.func @transform_0(%arg0: i32, %arg1: i32) -> (i32, i32) {
    %c0_i32 = arith.constant 0 : i32
    return %arg0, %arg1 : i32, i32
  }
  func.func @transform_1(%arg0: i32, %arg1: i32) -> (i32, i32) {
    %c0_i32 = arith.constant 0 : i32
    %c0_i32_0 = arith.constant 0 : i32
    return %c0_i32, %arg1 : i32, i32
  }
  func.func @transform_2(%arg0: i32, %arg1: i32) -> (i32, i32) {
    %c0_i32 = arith.constant 0 : i32
    return %arg0, %arg1 : i32, i32
  }
}

</mosaic_0001>

<bundles_post_ra>
// kernel: tpu_custom_call.1
= control target key start
LH: loop header
LB: loop body
LE: loop exit
PB: predicated region body
PF: predicated region fallthrough
CT: control target
= control target key end

     0   :  { %7 = vsyncpa [#allocation3], 0  ;;  %s177_s0 = inlined_call_operand.hbm [shape: f32[2,256], index: 0, kind: input, shape index: {}]   ;;  %s178_s1 = inlined_call_operand.hbm [shape: f32[1,512], index: 1, kind: input, shape index: {}]   ;;  %s179_s2 = inlined_call_operand.hbm [shape: f32[2,256], index: 2, kind: output, shape index: {}]  }
   0x1   :  { %8 = vsyncpa [#allocation6], 0 }
   0x2   :  { %9 = vsyncpa [#allocation4], 0  ;;  %s15_s11 = sshll.u32 %s177_s0, 4  ;;  %s150_s12 = smov [#allocation2]   ;;  %s16_s11 = int_to_ptr.hbm [resolvable:$true] %s15_s11 }
   0x3   :  { %s17_s13 = sshll.u32 %s150_s12, 4  ;;  %s26_s16 = sshll.u32 %s178_s1, 4  ;;  %s18_s13 = int_to_ptr.vmem [resolvable:$true] %s17_s13  ;;  %s27_s16 = int_to_ptr.hbm [resolvable:$true] %s26_s16 }
   0x4   :  { %20 = dma.hbm_to_vmem [thread:$0]  %s16_s11, 64, %s18_s13, [#allocation3]  }
   0x5   :  { %s151_s17 = smov [#allocation5]  }
   0x6   :  { %s28_s18 = sshll.u32 %s151_s17, 4  ;;  %s29_s18 = int_to_ptr.vmem [resolvable:$true] %s28_s18 }
   0x7   :  { %31 = dma.hbm_to_vmem [thread:$0]  %s27_s16, 32, %s29_s18, [#allocation6]  }
   0x8   :  { %144 = dma.done.wait [#allocation3], 64  }
   0x9   :  { %145 = vsyncadd [#allocation3], 4294967232 }
   0xa   :  { %146 = dma.done.wait [#allocation6], 32  }
   0xb   :  { %147 = vsyncadd [#allocation6], 4294967264  ;;  %v41_v0 = vld [vmem:[#allocation5] sm:$0x3]  ;;  %vm46_vm0 = vcmask 1041408   ;;  %s152_s0 = smov [#allocation7]  }
   0xc   :  { %v43_v1 = vperm.slane %v41_v0, 0  ;;  %v44_v2 = vperm.slane %v41_v0, 1  ;;  %v40_v3 = vld [vmem:[#allocation2] sm:$0xf]  ;;  %s56_s19 = sshll.u32 %s152_s0, 4  ;;  %s58_s21 = sshll.u32 %s179_s2, 4  ;;  %s57_s19 = int_to_ptr.vmem [resolvable:$true] %s56_s19  ;;  %s59_s21 = int_to_ptr.hbm [resolvable:$true] %s58_s21 }
   0xe   :  { %v45_v4 = vrot.slane %v44_v2, 6 }
  0x10   :  { %v47_v5 = vsel %vm46_vm0, %v43_v1, %v45_v4 }
  0x11   :  { %v49_v6 = vadd.f32 %v47_v5, %v40_v3 }
  0x13   :  { %50 = vst [vmem:[#allocation7] sm:$0xf] %v49_v6 }
  0x14   :  { %61 = dma.vmem_to_hbm [thread:$0]  %s57_s19, 64, %s59_s21, [#allocation4]  }
  0x15   :  { %148 = dma.done.wait [#allocation4], 64  }
  0x16   :  { %149 = vsyncadd [#allocation4], 4294967232 }
  0x17   :  { %66 = vsyncpa [#allocation3], 1 }
  0x18   :  { %67 = vsyncpa [#allocation6], 1 }
  0x19   :  { %68 = vsyncpa [#allocation4], 1 }

</bundles_post_ra>
